<compile_context>
chip_gen: v7x
topology: tpu7x:2x2x1
jax: 0.10.0
libtpu: 0.0.40
codegen_flags: <defaults>
</compile_context>

<pallas_src>
import math
from functools import lru_cache

import numpy as np
import jax
import jax.numpy as jnp
from jax.experimental import pallas as pl
from jax.experimental.pallas import tpu as pltpu

LANES = 128


# ---------------------------------------------------------------------------
# Deterministic Clebsch-Gordan coefficients (the `cg` constructor argument).
# ---------------------------------------------------------------------------
@lru_cache(maxsize=None)
def _cg_coefficient(j1, m1, j2, m2, J, M):
    """<j1 m1 j2 m2 | J M> via the Racah formula (integer l's)."""
    if m1 + m2 != M or J < abs(j1 - j2) or J > j1 + j2:
        return 0.0
    f = math.factorial
    pref = math.sqrt(
        (2 * J + 1)
        * f(J + j1 - j2) * f(J - j1 + j2) * f(j1 + j2 - J)
        / f(j1 + j2 + J + 1)
    )
    pref *= math.sqrt(
        f(J + M) * f(J - M) * f(j1 - m1) * f(j1 + m1) * f(j2 - m2) * f(j2 + m2)
    )
    s = 0.0
    for k in range(0, j1 + j2 - J + 1):
        dens = (k, j1 + j2 - J - k, j1 - m1 - k, j2 + m2 - k,
                J - j2 + m1 + k, J - j1 - m2 + k)
        if any(d < 0 for d in dens):
            continue
        term = (-1.0) ** k
        for d in dens:
            term /= f(d)
        s += term
    return pref * s


class ClebschGordan:
    """Dense CG tables cg[l1, l2, L] with shape (2l1+1, 2l2+1, 2L+1)."""

    def __init__(self):
        self._cache = {}

    def coeffs(self, l1, l2, L):
        key = (l1, l2, L)
        if key not in self._cache:
            cg = np.zeros((2 * l1 + 1, 2 * l2 + 1, 2 * L + 1), dtype=np.float64)
            for m1 in range(-l1, l1 + 1):
                for m2 in range(-l2, l2 + 1):
                    M = m1 + m2
                    if abs(M) <= L:
                        cg[m1 + l1, m2 + l2, M + L] = _cg_coefficient(l1, m1, l2, m2, L, M)
            self._cache[key] = cg
        return self._cache[key]


# ---------------------------------------------------------------------------
# VMEM budgeting (per generation: v5e/v6e 128 MiB, v7x 64 MiB per TC).
# ---------------------------------------------------------------------------
@lru_cache(maxsize=1)
def _vmem_budget():
    """(tile-sizing budget bytes, explicit scoped-vmem limit bytes)."""
    try:
        cap = int(getattr(pltpu.get_tpu_info(), "vmem_capacity_bytes"))
        budget = max(16 << 20, int(cap * 0.60))
        limit = max(32 << 20, min(int(cap * 0.90), cap - (4 << 20)))
        return budget, limit
    except Exception:
        # Conservative fallback: safe on every chip (incl. v7x's 64 MiB VMEM).
        return 24 << 20, 48 << 20


def _choose_tr(R, m1_sz, q1, m2_sz, q2, mtot, budget):
    """Pick the sample-row tile (rows of 128 samples) from the VMEM budget."""
    feat = mtot * q1 * q2
    # double-buffered in/out blocks + ~one out-block worth of live accumulators
    row_bytes = 4 * LANES * (2 * (feat + m1_sz * q1 + m2_sz * q2) + feat)
    tr_budget = max(8, (budget // max(row_bytes, 1)) // 8 * 8)
    if R < 16:
        return R                      # single full block (block dim == array dim)
    # >= 2 grid steps so v7x's second TensorCore has work ("parallel" axis).
    nsteps = max(2, pl.cdiv(R, tr_budget))
    tr = pl.cdiv(pl.cdiv(R, nsteps), 8) * 8
    return max(8, min(tr, tr_budget))


# ---------------------------------------------------------------------------
# Pallas kernel: fused-over-L CG combine for one (l1, l2) pair.
#
# Kernel-side layouts (samples as a dense (rows, 128) trailing pair):
#   A : [2l1+1, Q1, tr, 128]   B : [2l2+1, Q2, tr, 128]
#   O : [M_total, Q1, Q2, tr, 128]   with  M_total = sum_L (2L+1)
#   O[Mc,q1,q2,r,n] = sum_{m1,m2} cg_full[m1,m2,Mc] * A[m1,q1,r,n] * B[m2,q2,r,n]
# The host flattens (q1, q2) -> p = q1*Q2 + q2 (the mode='full' ordering).
# ---------------------------------------------------------------------------
def _make_fused_kernel(cg_full, q1, q2, tr):
    m1_sz, m2_sz, mtot = cg_full.shape

    # Static schedule: nonzero (m1, m2) pairs ordered by diagonal m1+m2, so only
    # the accumulators of the current diagonal are live; each M is stored to
    # o_ref immediately after its last contributing term (bounded live ranges).
    pairs = sorted(
        [(m1, m2) for m1 in range(m1_sz) for m2 in range(m2_sz)
         if np.any(cg_full[m1, m2])],
        key=lambda p: (p[0] + p[1], p[0]))
    last_for_M = {}
    for idx, (m1, m2) in enumerate(pairs):
        for M in np.nonzero(cg_full[m1, m2])[0]:
            last_for_M[int(M)] = idx
    zero_Ms = [M for M in range(mtot) if M not in last_for_M]

    def kernel(a_ref, b_ref, o_ref):
        for M in zero_Ms:  # normally empty; safety for all-zero CG columns
            o_ref[M] = jnp.zeros((q1, q2, tr, LANES), o_ref.dtype)

        a_cache, b_cache = {}, {}   # each slice loaded exactly once
        accs = {}
        for idx, (m1, m2) in enumerate(pairs):
            if m1 not in a_cache:
                a_cache[m1] = a_ref[m1]          # [Q1, tr, 128]
            if m2 not in b_cache:
                b_cache[m2] = b_ref[m2]          # [Q2, tr, 128]
            # Implicit broadcast multiply -> [Q1, Q2, tr, 128]; product shared
            # across every (L, M) this (m1, m2) contributes to.
            pr = a_cache[m1][:, None] * b_cache[m2][None, :]
            col = cg_full[m1, m2]
            for M in np.nonzero(col)[0]:
                M = int(M)
                term = pr * float(col[M])
                accs[M] = term if M not in accs else accs[M] + term
                if last_for_M[M] == idx:
                    o_ref[M] = accs[M].astype(o_ref.dtype)
                    del accs[M]

    return kernel


_KERNEL_CACHE = {}


def cg_combine_fused(a_t, b_t, cg_full, out_dtype=jnp.float32):
    """a_t: [2l1+1, Q1, R, 128], b_t: [2l2+1, Q2, R, 128],
       cg_full: [2l1+1, 2l2+1, M_total]  ->  [M_total, Q1, Q2, R, 128]."""
    m1_sz, q1, R, lanes = a_t.shape
    m2_sz, q2, R2, lanes2 = b_t.shape
    assert lanes == LANES and lanes2 == LANES and R == R2
    cg_full = np.asarray(cg_full, dtype=np.float64)
    mtot = cg_full.shape[2]

    budget, vmem_limit = _vmem_budget()
    tr = _choose_tr(R, m1_sz, q1, m2_sz, q2, mtot, budget)
    R_pad = pl.cdiv(R, tr) * tr
    if R_pad != R:
        a_t = jnp.pad(a_t, ((0, 0), (0, 0), (0, R_pad - R), (0, 0)))
        b_t = jnp.pad(b_t, ((0, 0), (0, 0), (0, R_pad - R), (0, 0)))

    key = (m1_sz, q1, m2_sz, q2, mtot, tr, R_pad,
           np.dtype(out_dtype).str, cg_full.tobytes())
    fn = _KERNEL_CACHE.get(key)
    if fn is None:
        kernel = _make_fused_kernel(cg_full, q1, q2, tr)
        fn = pl.pallas_call(
            kernel,
            grid=(R_pad // tr,),
            in_specs=[
                pl.BlockSpec((m1_sz, q1, tr, LANES), lambda i: (0, 0, i, 0)),
                pl.BlockSpec((m2_sz, q2, tr, LANES), lambda i: (0, 0, i, 0)),
            ],
            out_specs=pl.BlockSpec((mtot, q1, q2, tr, LANES),
                                   lambda i: (0, 0, 0, i, 0)),
            out_shape=jax.ShapeDtypeStruct((mtot, q1, q2, R_pad, LANES), out_dtype),
            compiler_params=pltpu.CompilerParams(
                dimension_semantics=("parallel",),
                vmem_limit_bytes=vmem_limit),
        )
        _KERNEL_CACHE[key] = fn

    out = fn(a_t, b_t)
    if R_pad != R:
        out = out[..., :R, :]
    return out
    # TODO(synk): for large l1,l2 (>=32 nonzero (m1,m2) pairs) an MXU path that
    # stacks pair products and contracts with cg_flat[M_total, K] via jnp.dot
    # would relieve the VALU; not needed for the small-l regime exercised here.


def _to_kernel_layout(x, r):
    """[N, m, Q] -> [m, Q, r, 128] (pad samples to r*128 with zeros)."""
    n = x.shape[0]
    xt = jnp.transpose(x, (1, 2, 0))                    # [m, Q, N]
    pad = r * LANES - n
    if pad:
        xt = jnp.pad(xt, ((0, 0), (0, 0), (0, pad)))
    return xt.reshape(xt.shape[0], xt.shape[1], r, LANES)


# ---------------------------------------------------------------------------
# CGIteration port (mode='full').
# ---------------------------------------------------------------------------
class CGIterationPallas:
    def __init__(self, cg, all_species, L_max=None):
        self.cg = cg
        self.all_species = all_species
        self.L_max = L_max if L_max is not None else 100
        self.selections = {}

    def initialize(self, ghost1, ghost2, mode='full'):
        assert mode == 'full'
        ghost_out = {}
        selected_features = {}
        for (a1, l1, s1), q_max_1 in ghost1.items():
            for (a2, l2, s2), q_max_2 in ghost2.items():
                if a1 != a2:
                    continue
                for L in range(abs(l1 - l2), min(l1 + l2, self.L_max) + 1):
                    S = s1 * s2 * (-1) ** (l1 + l2 + L)
                    if (a1, L, S) not in ghost_out:
                        ghost_out[a1, L, S] = 0
                    ghost_out[a1, L, S] += q_max_1 * q_max_2
                    selected_features[l1, s1, l2, s2, L, S] = np.array(
                        [[q1, q2] for q1 in range(q_max_1) for q2 in range(q_max_2)],
                        dtype=np.int64)
        self.selections = selected_features
        return ghost_out

    def forward(self, tmap1, tmap2):
        # tmap*: dict {(a_i, lam, sigma): jnp.ndarray [N, 2*lam+1, q_max]}
        # Group selections by (l1,s1,l2,s2); every pair's L values AND every
        # species are computed by one fused pallas_call (species concatenated
        # along the sample-row axis).  Per-output-key block ordering matches
        # the original module (pairs in selection first-appearance order).
        pair_groups = {}
        for (l1, s1, l2, s2, L, S) in self.selections.keys():
            pair_groups.setdefault((l1, s1, l2, s2), []).append((L, S))

        block_dictionary = {}
        for (l1, s1, l2, s2), ls in pair_groups.items():
            cg_full = np.concatenate(
                [self.cg.coeffs(l1, l2, L) for (L, _S) in ls], axis=2)
            mtot = cg_full.shape[2]

            specs, a_parts, b_parts = [], [], []
            q1_ref = q2_ref = None
            for a_i in self.all_species:
                A = jnp.asarray(tmap1[(a_i, l1, s1)], dtype=jnp.float32)  # [N, 2l1+1, Q1]
                B = jnp.asarray(tmap2[(a_i, l2, s2)], dtype=jnp.float32)  # [N, 2l2+1, Q2]
                n, q1, q2 = A.shape[0], A.shape[2], B.shape[2]
                if q1_ref is None:
                    q1_ref, q2_ref = q1, q2
                assert (q1, q2) == (q1_ref, q2_ref), \
                    "mode='full' selections assume uniform q_max across species"
                r = pl.cdiv(n, LANES)
                specs.append((a_i, n, r))
                a_parts.append(_to_kernel_layout(A, r))
                b_parts.append(_to_kernel_layout(B, r))

            a_cat = a_parts[0] if len(a_parts) == 1 else jnp.concatenate(a_parts, axis=2)
            b_cat = b_parts[0] if len(b_parts) == 1 else jnp.concatenate(b_parts, axis=2)

            out = cg_combine_fused(a_cat, b_cat, cg_full)   # [Mtot,Q1,Q2,R,128]

            r_off = 0
            for (a_i, n, r) in specs:
                o = out[:, :, :, r_off:r_off + r, :]
                r_off += r
                o = o.reshape(mtot, q1_ref, q2_ref, r * LANES)[..., :n]
                # -> [N, Mtot, Q1*Q2] with p = q1*Q2 + q2 (mode='full' ordering)
                o = jnp.transpose(o, (3, 0, 1, 2)).reshape(n, mtot, q1_ref * q2_ref)
                off = 0
                for (L, S) in ls:
                    w = 2 * L + 1
                    block_dictionary.setdefault((a_i, L, S), []).append(o[:, off:off + w, :])
                    off += w

        # TODO(synk): TensorMap / Labels metadata (samples, 'm' components,
        # 'mixed' properties) is bookkeeping only; output is a plain dict.
        return {k: jnp.concatenate(v, axis=-1) for k, v in block_dictionary.items()}


def _reference_forward(module, tmap1, tmap2):
    """Pure-numpy reference of the same forward pass (for verification)."""
    block_dictionary = {}
    for a_i in module.all_species:
        for (l1, s1, l2, s2, L, S), _sel in module.selections.items():
            A = np.asarray(tmap1[(a_i, l1, s1)], dtype=np.float64)
            B = np.asarray(tmap2[(a_i, l2, s2)], dtype=np.float64)
            cg = module.cg.coeffs(l1, l2, L)
            N, _, Q1 = A.shape
            _, _, Q2 = B.shape
            out = np.einsum('naq,nbp,abM->nMqp', A, B, cg).reshape(N, 2 * L + 1, Q1 * Q2)
            block_dictionary.setdefault((a_i, L, S), []).append(out)
    return {k: np.concatenate(v, axis=-1) for k, v in block_dictionary.items()}


if __name__ == "__main__":
    all_species = [1, 6]
    n_samples = 8

    ghost1 = {}
    ghost2 = {}
    for a in all_species:
        ghost1[(a, 0, 1)] = 3
        ghost1[(a, 1, 1)] = 3
        ghost2[(a, 0, 1)] = 2
        ghost2[(a, 1, 1)] = 2

    cg = ClebschGordan()
    module = CGIterationPallas(cg, all_species, L_max=2)
    ghost_out = module.initialize(ghost1, ghost2, mode='full')

    key = jax.random.PRNGKey(0)

    def make_tmap(ghost, key):
        tmap = {}
        for (a, l, s), q_max in ghost.items():
            key, sub = jax.random.split(key)
            tmap[(a, l, s)] = jax.random.normal(
                sub, (n_samples, 2 * l + 1, q_max), dtype=jnp.float32)
        return tmap, key

    tmap1, key = make_tmap(ghost1, key)
    tmap2, key = make_tmap(ghost2, key)

    out = module.forward(tmap1, tmap2)
    jax.block_until_ready(out)

    ref = _reference_forward(module, tmap1, tmap2)
    for k, v in out.items():
        assert v.shape == (n_samples, 2 * k[1] + 1, ghost_out[k]), (k, v.shape)
        np.testing.assert_allclose(np.asarray(v), ref[k], rtol=1e-4, atol=1e-4)

    print("KERNEL_OK")
</pallas_src>

<mosaic_0001>
module attributes {stable_mosaic.version = 11 : i64} {
  func.func @kernel(%arg0: i32, %arg1: memref<1x3x2x128xf32, #tpu.memory_space<vmem>>, %arg2: memref<1x2x2x128xf32, #tpu.memory_space<vmem>>, %arg3: memref<1x3x2x2x128xf32, #tpu.memory_space<vmem>>) attributes {dimension_semantics = [#tpu.dimension_semantics<parallel>], iteration_bounds = array<i64: 1>, scalar_prefetch = 0 : i64, scratch_operands = 0 : i64, tpu.core_type = #tpu.core_type<tc>, window_params = [{transform_indices = @transform_0, window_bounds = array<i64: 1, 3, 2, 128>}, {transform_indices = @transform_1, window_bounds = array<i64: 1, 2, 2, 128>}, {transform_indices = @transform_2, window_bounds = array<i64: 1, 3, 2, 2, 128>}]} {
    %c0 = arith.constant 0 : index
    %c0_0 = arith.constant 0 : index
    %c0_1 = arith.constant 0 : index
    %c0_2 = arith.constant 0 : index
    %0 = vector.load %arg1[%c0, %c0_0, %c0_1, %c0_2] : memref<1x3x2x128xf32, #tpu.memory_space<vmem>>, vector<1x3x2x128xf32>
    %1 = vector.shape_cast %0 : vector<1x3x2x128xf32> to vector<3x2x128xf32>
    %c0_3 = arith.constant 0 : index
    %c0_4 = arith.constant 0 : index
    %c0_5 = arith.constant 0 : index
    %c0_6 = arith.constant 0 : index
    %2 = vector.load %arg2[%c0_3, %c0_4, %c0_5, %c0_6] : memref<1x2x2x128xf32, #tpu.memory_space<vmem>>, vector<1x2x2x128xf32>
    %3 = vector.shape_cast %2 : vector<1x2x2x128xf32> to vector<2x2x128xf32>
    %4 = vector.shape_cast %1 : vector<3x2x128xf32> to vector<3x1x2x128xf32>
    %5 = vector.shape_cast %3 : vector<2x2x128xf32> to vector<1x2x2x128xf32>
    %6 = vector.broadcast %4 : vector<3x1x2x128xf32> to vector<3x2x2x128xf32>
    %7 = vector.broadcast %5 : vector<1x2x2x128xf32> to vector<3x2x2x128xf32>
    %8 = arith.mulf %6, %7 : vector<3x2x2x128xf32>
    %cst = arith.constant 1.000000e+00 : f32
    %9 = vector.broadcast %cst : f32 to vector<3x2x2x128xf32>
    %10 = arith.mulf %8, %9 : vector<3x2x2x128xf32>
    %c0_7 = arith.constant 0 : index
    %c0_8 = arith.constant 0 : index
    %c0_9 = arith.constant 0 : index
    %c0_10 = arith.constant 0 : index
    %c0_11 = arith.constant 0 : index
    %11 = vector.load %arg3[%c0_7, %c0_8, %c0_9, %c0_10, %c0_11] : memref<1x3x2x2x128xf32, #tpu.memory_space<vmem>>, vector<1x3x2x2x128xf32>
    %12 = vector.shape_cast %11 : vector<1x3x2x2x128xf32> to vector<3x2x2x128xf32>
    %13 = vector.shape_cast %10 : vector<3x2x2x128xf32> to vector<1x3x2x2x128xf32>
    tpu.vector_store %arg3[%c0_7, %c0_8, %c0_9, %c0_10, %c0_11], %13 {strides = array<i32>} : memref<1x3x2x2x128xf32, #tpu.memory_space<vmem>>, vector<1x3x2x2x128xf32>,
    return
  }
  func.func @transform_0(%arg0: i32) -> (i32, i32, i32, i32) {
    %c0_i32 = arith.constant 0 : i32
    %c0_i32_0 = arith.constant 0 : i32
    %c0_i32_1 = arith.constant 0 : i32
    %c0_i32_2 = arith.constant 0 : i32
    return %c0_i32, %c0_i32_0, %arg0, %c0_i32_1 : i32, i32, i32, i32
  }
  func.func @transform_1(%arg0: i32) -> (i32, i32, i32, i32) {
    %c0_i32 = arith.constant 0 : i32
    %c0_i32_0 = arith.constant 0 : i32
    %c0_i32_1 = arith.constant 0 : i32
    %c0_i32_2 = arith.constant 0 : i32
    return %c0_i32, %c0_i32_0, %arg0, %c0_i32_1 : i32, i32, i32, i32
  }
  func.func @transform_2(%arg0: i32) -> (i32, i32, i32, i32, i32) {
    %c0_i32 = arith.constant 0 : i32
    %c0_i32_0 = arith.constant 0 : i32
    %c0_i32_1 = arith.constant 0 : i32
    %c0_i32_2 = arith.constant 0 : i32
    %c0_i32_3 = arith.constant 0 : i32
    return %c0_i32, %c0_i32_0, %c0_i32_1, %arg0, %c0_i32_2 : i32, i32, i32, i32, i32
  }
}

</mosaic_0001>

<bundles_post_ra>
// kernel: tpu_custom_call.1
= control target key start
LH: loop header
LB: loop body
LE: loop exit
PB: predicated region body
PF: predicated region fallthrough
CT: control target
= control target key end

     0   :  { %7 = vsyncpa [#allocation3], 0  ;;  %s217_s0 = inlined_call_operand.hbm [shape: f32[1,3,2,128], index: 0, kind: input, shape index: {}]   ;;  %s218_s1 = inlined_call_operand.hbm [shape: f32[1,2,2,128], index: 1, kind: input, shape index: {}]   ;;  %s219_s2 = inlined_call_operand.hbm [shape: f32[1,3,2,2,128], index: 2, kind: output, shape index: {}]  }
   0x1   :  { %8 = vsyncpa [#allocation6], 0 }
   0x2   :  { %9 = vsyncpa [#allocation4], 0  ;;  %s152_s9 = smov [#allocation2]   ;;  %s80_s13 = scalar_lea.hbm %s217_s0, 96 }
   0x3   :  { %s15_s10 = sshll.u32 %s152_s9, 4  ;;  %p81_p0 = scmp.ne.s32.totalorder %s217_s0, %s80_s13  ;;  %s16_s10 = int_to_ptr.vmem [resolvable:$true] %s15_s10 }
   0x4   :  { %p84_p1 = scmp.lt.u32.totalorder %s80_s13, %s217_s0 }
   0x6   :  { %p86_p2 = pnand %p84_p1, %p81_p0 }
   0x8   :  { %89 = shalt.err (!%p86_p2)
}
   0x9   :  { %s90_s18 = scalar_lea.vmem %s16_s10, 96  ;;  %p95_p4 = scmp.lt.s32.totalorder %s16_s10, %s16_s10 }
   0xa   :  { %p91_p3 = scmp.ne.s32.totalorder %s16_s10, %s90_s18  ;;  %p96_p5 = scmp.lt.s32.totalorder %s90_s18, %s90_s18 }
   0xc   :  { %p97_p6 = por %p96_p5, %p95_p4 }
   0xe   :  { %p98_p7 = pnand %p97_p6, %p91_p3 }
  0x10   :  { %101 = shalt.err (!%p98_p7)
}
  0x11   :  { %s153_s19 = smov 32   ;;  %s154_s20 = smov 2  }
  0x12   :  { %21 = dma.hbm_to_vmem [thread:$0]  %s217_s0, 96, %s16_s10, [#allocation3], %s153_s19, %s153_s19, %s154_s20  }
  0x13   :  { %s155_s23 = smov [#allocation5]   ;;  %s102_s27 = scalar_lea.hbm %s218_s1, 64 }
  0x14   :  { %s27_s24 = sshll.u32 %s155_s23, 4  ;;  %p103_p8 = scmp.ne.s32.totalorder %s218_s1, %s102_s27  ;;  %s28_s24 = int_to_ptr.vmem [resolvable:$true] %s27_s24 }
  0x15   :  { %p106_p9 = scmp.lt.u32.totalorder %s102_s27, %s218_s1 }
  0x17   :  { %p108_p10 = pnand %p106_p9, %p103_p8 }
  0x19   :  { %111 = shalt.err (!%p108_p10)
}
  0x1a   :  { %s112_s4 = scalar_lea.vmem %s28_s24, 64  ;;  %p117_p12 = scmp.lt.s32.totalorder %s28_s24, %s28_s24 }
  0x1b   :  { %p113_p11 = scmp.ne.s32.totalorder %s28_s24, %s112_s4  ;;  %p118_p13 = scmp.lt.s32.totalorder %s112_s4, %s112_s4 }
  0x1d   :  { %p119_p0 = por %p118_p13, %p117_p12 }
  0x1f   :  { %p120_p1 = pnand %p119_p0, %p113_p11 }
  0x21   :  { %123 = shalt.err (!%p120_p1)
}
  0x22   :  { %33 = dma.hbm_to_vmem [thread:$0]  %s218_s1, 64, %s28_s24, [#allocation6], %s153_s19, %s153_s19, %s154_s20  }
  0x23   :  { %146 = dma.done.wait [#allocation3], 96  }
  0x24   :  { %147 = vsyncadd [#allocation3], 4294967200 }
  0x25   :  { %148 = dma.done.wait [#allocation6], 64  }
  0x26   :  { %149 = vsyncadd [#allocation6], 4294967232  ;;  %s156_s6 = smov [#allocation7]   ;;  %v40_v0 = vld [vmem:[#allocation2] sm:$0x3] }
  0x27   :  { %s62_s7 = sshll.u32 %s156_s6, 4  ;;  %v43_v1 = vld [vmem:[#allocation5] sm:$0x3]  ;;  %v44_v2 = vld [vmem:[#allocation5 + $0x2] sm:$0x3]  ;;  %s63_s7 = int_to_ptr.vmem [resolvable:$true] %s62_s7 }
  0x28   :  { %v45_v3 = vmul.f32 %v43_v1, %v40_v0  ;;  %v46_v4 = vmul.f32 %v44_v2, %v40_v0  ;;  %v41_v5 = vld [vmem:[#allocation2 + $0x2] sm:$0x3]  ;;  %v42_v6 = vld [vmem:[#allocation2 + $0x4] sm:$0x3]  ;;  %s124_s1 = scalar_lea.vmem %s63_s7, 192  ;;  %p129_p3 = scmp.lt.s32.totalorder %s63_s7, %s63_s7 }
  0x29   :  { %v47_v7 = vmul.f32 %v43_v1, %v41_v5  ;;  %v48_v8 = vmul.f32 %v44_v2, %v41_v5  ;;  %v49_v9 = vmul.f32 %v43_v1, %v42_v6  ;;  %v50_v10 = vmul.f32 %v44_v2, %v42_v6  ;;  %p125_p2 = scmp.ne.s32.totalorder %s63_s7, %s124_s1  ;;  %p130_p4 = scmp.lt.s32.totalorder %s124_s1, %s124_s1 }
  0x2a   :  { %51 = vst [vmem:[#allocation7] sm:$0x3] %v45_v3  ;;  %52 = vst [vmem:[#allocation7 + $0x2] sm:$0x3] %v46_v4 }
  0x2b   :  { %53 = vst [vmem:[#allocation7 + $0x4] sm:$0x3] %v47_v7  ;;  %54 = vst [vmem:[#allocation7 + $0x6] sm:$0x3] %v48_v8  ;;  %p131_p5 = por %p130_p4, %p129_p3 }
  0x2c   :  { %55 = vst [vmem:[#allocation7 + $0x8] sm:$0x3] %v49_v9  ;;  %56 = vst [vmem:[#allocation7 + $0xa] sm:$0x3] %v50_v10 }
  0x2d   :  { %p132_p6 = pnand %p131_p5, %p125_p2 }
  0x2f   :  { %135 = shalt.err (!%p132_p6)
}
  0x30   :  { %s136_s10 = scalar_lea.hbm %s219_s2, 192 }
  0x31   :  { %p137_p7 = scmp.ne.s32.totalorder %s219_s2, %s136_s10  ;;  %p140_p8 = scmp.lt.u32.totalorder %s136_s10, %s219_s2 }
  0x33   :  { %p142_p9 = pnand %p140_p8, %p137_p7 }
  0x35   :  { %145 = shalt.err (!%p142_p9)
}
  0x36   :  { %68 = dma.vmem_to_hbm [thread:$0]  %s63_s7, 192, %s219_s2, [#allocation4], %s153_s19, %s153_s19, %s154_s20  }
  0x37   :  { %150 = dma.done.wait [#allocation4], 192  }
  0x38   :  { %151 = vsyncadd [#allocation4], 4294967104 }
  0x39   :  { %72 = vsyncpa [#allocation3], 1 }
  0x3a   :  { %73 = vsyncpa [#allocation6], 1 }
  0x3b   :  { %74 = vsyncpa [#allocation4], 1 }

</bundles_post_ra>
